<compile_context>
chip_gen: v7x
topology: tpu7x:2x2x1
jax: 0.10.0
libtpu: 0.0.40
codegen_flags: <defaults>
</compile_context>

<pallas_src>
import functools

import jax
import jax.numpy as jnp
from jax import lax
from jax.experimental import pallas as pl
from jax.experimental.pallas import tpu as pltpu

GATE_LANE = 128  # each gate (r, z, n) starts at its own 128-lane boundary


def _rup(x, m):
    return (x + m - 1) // m * m


def _slab_layout(embed_dim, hidden_dim, tags_size):
    """Row offsets of the packed, lane-dense (rows, 384) f32 parameter slab.

    Column layout (width = 3*128):
      lanes   0:H      -> r gate
      lanes 128:128+H  -> z gate
      lanes 256:256+H  -> n gate
      lanes   0:T      -> tag logits (for the W_l / b_l rows)
    All padding columns are exact zeros (required so padded matmuls are exact).
    """
    assert hidden_dim <= 128, "hidden_dim must fit one 128-lane vreg"
    assert tags_size <= 128, "tags_size must fit one 128-lane vreg"
    width = 3 * GATE_LANE
    wi = 0                                  # (E, 384) input weights
    wh = wi + _rup(embed_dim, 8)            # (H, 384) recurrent weights
    b = wh + _rup(hidden_dim, 8)            # row b: folded input bias; row b+1: b_hn
    wl = b + 8                              # (H, 384) hidden2tag weight (cols 0:T)
    bl = wl + _rup(hidden_dim, 8)           # (1, 384) hidden2tag bias (cols 0:T)
    rows = bl + 8
    return dict(width=width, wi=wi, wh=wh, b=b, wl=wl, bl=bl, rows=rows)


def gru_kernel(x_ref,        # VMEM (seq, E) f32 gathered embeddings
               slab_ref,     # VMEM (rows, 384) packed weights + biases
               out_ref,      # VMEM (seq, 128) lane-dense log-prob block
               xw_ref,       # VMEM scratch (seq, 384): input projections
               hs_ref,       # VMEM scratch (seq, H): per-step hidden states
               *, hidden, tags, layout):
    seq, E = x_ref.shape
    H = hidden
    G = GATE_LANE

    # ---- static slices of the packed parameter slab (single DMA'd input) ----
    w_i3 = slab_ref[layout["wi"]:layout["wi"] + E, :]        # (E, 384)
    w_h3 = slab_ref[layout["wh"]:layout["wh"] + H, :]        # (H, 384)
    bias_x = slab_ref[layout["b"]:layout["b"] + 1, :]        # (1, 384) folded in-bias
    bias_hn = slab_ref[layout["b"] + 1:layout["b"] + 2, :]   # (1, 384) only n lanes
    w_l = slab_ref[layout["wl"]:layout["wl"] + H, 0:G]       # (H, 128)
    b_l = slab_ref[layout["bl"]:layout["bl"] + 1, 0:G]       # (1, 128)

    # ---- 1) all input projections (+ folded biases) in ONE MXU call, then
    #         park them in VMEM so the recurrence reads rows with plain vlds ----
    xw_ref[...] = (jnp.dot(x_ref[...], w_i3, preferred_element_type=jnp.float32)
                   + bias_x)

    # ---- 2) serial recurrence: one lane-dense (1,H)@(H,384) matmul per step,
    #         gates at lane offset 0 of their own vreg (no cross-lane rotates) ----
    def step(t, h):
        xw_t = xw_ref[pl.ds(t, 1), :]                                    # (1, 384)
        hw = jnp.dot(h, w_h3, preferred_element_type=jnp.float32) + bias_hn
        r = jax.nn.sigmoid(xw_t[:, 0:H] + hw[:, 0:H])
        z = jax.nn.sigmoid(xw_t[:, G:G + H] + hw[:, G:G + H])
        n = jnp.tanh(xw_t[:, 2 * G:2 * G + H] + r * hw[:, 2 * G:2 * G + H])
        h_new = (1.0 - z) * n + z * h                                    # (1, H)
        hs_ref[pl.ds(t, 1), :] = h_new          # vst slot; off the latency chain
        return h_new

    h0 = jnp.zeros((1, H), jnp.float32)         # init_hidden()
    lax.fori_loop(0, seq, step, h0, unroll=min(seq, 8))

    # ---- 3) hidden2tag + log_softmax, computed lane-dense as (seq, 128);
    #         padded lanes are masked out and sliced away in the wrapper ----
    tag_full = jnp.dot(hs_ref[...], w_l, preferred_element_type=jnp.float32) + b_l
    lane = lax.broadcasted_iota(jnp.int32, tag_full.shape, 1)
    tag_masked = jnp.where(lane < tags, tag_full, -1e30)
    m = jnp.max(tag_masked, axis=1, keepdims=True)
    shifted = tag_masked - m
    lse = jnp.log(jnp.sum(jnp.exp(shifted), axis=1, keepdims=True))
    out_ref[...] = shifted - lse


def pack_params(w_ih, w_hh, b_ih, b_hh, w_lin, b_lin):
    """Pack PyTorch-layout GRU + Linear params into one lane-dense f32 slab.

    The slab is zero-initialized; padded columns MUST stay exactly zero so the
    padded matmuls (3H:384 gate lanes, T:128 tag lanes) are numerically exact.
    """
    H = w_hh.shape[1]
    E = w_ih.shape[1]
    T = w_lin.shape[0]
    layout = _slab_layout(E, H, T)
    slab = jnp.zeros((layout["rows"], layout["width"]), jnp.float32)

    # gate-split (PyTorch order r, z, n) and transpose to (in_dim, H)
    w_ir, w_iz, w_in = w_ih[0:H].T, w_ih[H:2 * H].T, w_ih[2 * H:3 * H].T
    w_hr, w_hz, w_hn = w_hh[0:H].T, w_hh[H:2 * H].T, w_hh[2 * H:3 * H].T

    wi, wh = layout["wi"], layout["wh"]
    slab = slab.at[wi:wi + E, 0:H].set(w_ir)
    slab = slab.at[wi:wi + E, GATE_LANE:GATE_LANE + H].set(w_iz)
    slab = slab.at[wi:wi + E, 2 * GATE_LANE:2 * GATE_LANE + H].set(w_in)
    slab = slab.at[wh:wh + H, 0:H].set(w_hr)
    slab = slab.at[wh:wh + H, GATE_LANE:GATE_LANE + H].set(w_hz)
    slab = slab.at[wh:wh + H, 2 * GATE_LANE:2 * GATE_LANE + H].set(w_hn)

    # row b: biases folded into the input projection (added once to xw)
    b = layout["b"]
    slab = slab.at[b, 0:H].set(b_ih[0:H] + b_hh[0:H])                     # b_ir+b_hr
    slab = slab.at[b, GATE_LANE:GATE_LANE + H].set(b_ih[H:2 * H] + b_hh[H:2 * H])
    slab = slab.at[b, 2 * GATE_LANE:2 * GATE_LANE + H].set(b_ih[2 * H:3 * H])
    # row b+1: b_hn, added to hw each step (stays inside r*(...), PyTorch exact)
    slab = slab.at[b + 1, 2 * GATE_LANE:2 * GATE_LANE + H].set(b_hh[2 * H:3 * H])

    slab = slab.at[layout["wl"]:layout["wl"] + H, 0:T].set(w_lin.T)
    slab = slab.at[layout["bl"], 0:T].set(b_lin)
    return slab


@functools.partial(jax.jit, static_argnames=("hidden_dim", "tags_size"))
def gru_model_forward(char_idxs, emb, slab, *, hidden_dim, tags_size):
    seq = char_idxs.shape[0]
    vocab, embed_dim = emb.shape
    layout = _slab_layout(embed_dim, hidden_dim, tags_size)

    # Gather the per-timestep embeddings OUTSIDE the kernel: the (vocab, E)
    # table never occupies VMEM.  Clamp so out-of-vocab ids can't index OOB
    # (behavioral note: PyTorch would raise instead of clamping).
    idx = jnp.clip(char_idxs.astype(jnp.int32), 0, vocab - 1)
    x = emb[idx].astype(jnp.float32)                          # (seq, E)

    kernel = functools.partial(gru_kernel, hidden=hidden_dim, tags=tags_size,
                               layout=layout)

    # Explicit VMEM budget (tiny now: activations + slab + scratches + output),
    # so the footprint is documented and safe on v7x's 64 MiB physical VMEM.
    vmem_bytes = 4 * (seq * embed_dim + slab.size + seq * 128
                      + seq * layout["width"] + seq * hidden_dim)
    vmem_limit = int(max(4 * 1024 * 1024, 2 * vmem_bytes))

    out_full = pl.pallas_call(
        kernel,
        out_shape=jax.ShapeDtypeStruct((seq, 128), jnp.float32),
        in_specs=[pl.BlockSpec(memory_space=pltpu.MemorySpace.VMEM),
                  pl.BlockSpec(memory_space=pltpu.MemorySpace.VMEM)],
        out_specs=pl.BlockSpec(memory_space=pltpu.MemorySpace.VMEM),
        scratch_shapes=[pltpu.VMEM((seq, layout["width"]), jnp.float32),
                        pltpu.VMEM((seq, hidden_dim), jnp.float32)],
        compiler_params=pltpu.CompilerParams(vmem_limit_bytes=vmem_limit),
    )(x, slab)
    # lane-dense kernel output; valid tag columns are the first `tags_size`
    return out_full[:, :tags_size]


def init_params(key, vocab_size, embedding_dim, hidden_dim, tags_size):
    """Parameters in PyTorch layout (weight_ih/hh are (3H, in), gate order r,z,n)."""
    ks = jax.random.split(key, 7)
    k = 1.0 / jnp.sqrt(hidden_dim)
    emb = jax.random.normal(ks[0], (vocab_size, embedding_dim), jnp.float32)
    w_ih = jax.random.uniform(ks[1], (3 * hidden_dim, embedding_dim),
                              jnp.float32, -k, k)
    w_hh = jax.random.uniform(ks[2], (3 * hidden_dim, hidden_dim),
                              jnp.float32, -k, k)
    b_ih = jax.random.uniform(ks[3], (3 * hidden_dim,), jnp.float32, -k, k)
    b_hh = jax.random.uniform(ks[4], (3 * hidden_dim,), jnp.float32, -k, k)
    w_lin = jax.random.uniform(ks[5], (tags_size, hidden_dim), jnp.float32, -k, k)
    b_lin = jax.random.uniform(ks[6], (tags_size,), jnp.float32, -k, k)
    return emb, w_ih, w_hh, b_ih, b_hh, w_lin, b_lin


def reference_forward(char_idxs, emb, w_ih, w_hh, b_ih, b_hh, w_lin, b_lin):
    """Pure-JAX replica of the PyTorch forward."""
    H = w_hh.shape[1]
    x = emb[char_idxs]                                       # (seq, E)
    w_ir, w_iz, w_in = w_ih[0:H], w_ih[H:2 * H], w_ih[2 * H:3 * H]
    w_hr, w_hz, w_hn = w_hh[0:H], w_hh[H:2 * H], w_hh[2 * H:3 * H]
    b_ir, b_iz, b_in = b_ih[0:H], b_ih[H:2 * H], b_ih[2 * H:3 * H]
    b_hr, b_hz, b_hn = b_hh[0:H], b_hh[H:2 * H], b_hh[2 * H:3 * H]

    def step(h, x_t):
        r = jax.nn.sigmoid(x_t @ w_ir.T + b_ir + h @ w_hr.T + b_hr)
        z = jax.nn.sigmoid(x_t @ w_iz.T + b_iz + h @ w_hz.T + b_hz)
        n = jnp.tanh(x_t @ w_in.T + b_in + r * (h @ w_hn.T + b_hn))
        h_new = (1.0 - z) * n + z * h
        return h_new, h_new

    h0 = jnp.zeros((H,), jnp.float32)                        # init_hidden()
    _, hs = lax.scan(step, h0, x)                            # (seq, H)
    tag_space = hs @ w_lin.T + b_lin
    return jax.nn.log_softmax(tag_space, axis=1)


if __name__ == "__main__":
    vocab_size = 30
    embedding_dim = 16
    hidden_dim = 32
    tags_size = 4
    seq_len = 8

    key = jax.random.PRNGKey(0)
    k_params, k_idx = jax.random.split(key)
    emb, w_ih, w_hh, b_ih, b_hh, w_lin, b_lin = init_params(
        k_params, vocab_size, embedding_dim, hidden_dim, tags_size)
    char_idxs = jax.random.randint(k_idx, (seq_len,), 0, vocab_size, jnp.int32)

    slab = pack_params(w_ih, w_hh, b_ih, b_hh, w_lin, b_lin)
    out = gru_model_forward(char_idxs, emb, slab,
                            hidden_dim=hidden_dim, tags_size=tags_size)
    jax.block_until_ready(out)

    ref = reference_forward(char_idxs, emb, w_ih, w_hh, b_ih, b_hh,
                            w_lin, b_lin)
    assert out.shape == (seq_len, tags_size)
    assert jnp.allclose(out, ref, atol=1e-5, rtol=1e-5), "mismatch vs reference"
    print("KERNEL_OK")
</pallas_src>

<mosaic_0001>
module attributes {stable_mosaic.version = 11 : i64} {
  func.func @gru_kernel(%arg0: memref<8x16xf32, #tpu.memory_space<vmem>>, %arg1: memref<96x384xf32, #tpu.memory_space<vmem>>, %arg2: memref<8x128xf32, #tpu.memory_space<vmem>>, %arg3: memref<8x384xf32, #tpu.memory_space<vmem>>, %arg4: memref<8x32xf32, #tpu.memory_space<vmem>>) attributes {dimension_semantics = [], scalar_prefetch = 0 : i64, scratch_operands = 2 : i64, tpu.core_type = #tpu.core_type<tc>} {
    %c0 = arith.constant 0 : index
    %c0_0 = arith.constant 0 : index
    %0 = vector.load %arg1[%c0, %c0_0] : memref<96x384xf32, #tpu.memory_space<vmem>>, vector<16x384xf32>
    %c16 = arith.constant 16 : index
    %c0_1 = arith.constant 0 : index
    %1 = vector.load %arg1[%c16, %c0_1] : memref<96x384xf32, #tpu.memory_space<vmem>>, vector<32x384xf32>
    %c48 = arith.constant 48 : index
    %c0_2 = arith.constant 0 : index
    %2 = vector.load %arg1[%c48, %c0_2] : memref<96x384xf32, #tpu.memory_space<vmem>>, vector<1x384xf32>
    %c49 = arith.constant 49 : index
    %c0_3 = arith.constant 0 : index
    %3 = vector.load %arg1[%c49, %c0_3] : memref<96x384xf32, #tpu.memory_space<vmem>>, vector<1x384xf32>
    %c56 = arith.constant 56 : index
    %c0_4 = arith.constant 0 : index
    %4 = vector.load %arg1[%c56, %c0_4] : memref<96x384xf32, #tpu.memory_space<vmem>>, vector<32x128xf32>
    %c88 = arith.constant 88 : index
    %c0_5 = arith.constant 0 : index
    %5 = vector.load %arg1[%c88, %c0_5] : memref<96x384xf32, #tpu.memory_space<vmem>>, vector<1x128xf32>
    %c0_6 = arith.constant 0 : index
    %c0_7 = arith.constant 0 : index
    %6 = vector.load %arg0[%c0_6, %c0_7] : memref<8x16xf32, #tpu.memory_space<vmem>>, vector<8x16xf32>
    %cst = arith.constant dense<0.000000e+00> : vector<8x384xf32>
    %7 = tpu.matmul %6, %0, %cst {dimension_numbers = #tpu.dot_dimension_numbers<[1], [0], [0], [1], [0, 0, 1, 1], [], []>} : vector<8x16xf32>, vector<16x384xf32>, vector<8x384xf32> -> vector<8x384xf32>
    %8 = vector.broadcast %2 : vector<1x384xf32> to vector<8x384xf32>
    %9 = arith.addf %7, %8 : vector<8x384xf32>
    %c0_8 = arith.constant 0 : index
    %c0_9 = arith.constant 0 : index
    %10 = vector.load %arg3[%c0_8, %c0_9] : memref<8x384xf32, #tpu.memory_space<vmem>>, vector<8x384xf32>
    tpu.vector_store %arg3[%c0_8, %c0_9], %9 {strides = array<i32>} : memref<8x384xf32, #tpu.memory_space<vmem>>, vector<8x384xf32>,
    %cst_10 = arith.constant 0.000000e+00 : f32
    %11 = vector.broadcast %cst_10 : f32 to vector<1x32xf32>
    %c0_i32 = arith.constant 0 : i32
    %12 = arith.index_cast %c0_i32 : i32 to index
    %c0_11 = arith.constant 0 : index
    %13 = vector.load %arg3[%12, %c0_11] : memref<8x384xf32, #tpu.memory_space<vmem>>, vector<1x384xf32>
    %cst_12 = arith.constant dense<0.000000e+00> : vector<1x384xf32>
    %14 = tpu.matmul %11, %1, %cst_12 {dimension_numbers = #tpu.dot_dimension_numbers<[1], [0], [0], [1], [0, 0, 1, 1], [], []>} : vector<1x32xf32>, vector<32x384xf32>, vector<1x384xf32> -> vector<1x384xf32>
    %15 = arith.addf %14, %3 : vector<1x384xf32>
    %16 = vector.extract_strided_slice %13 {offsets = [0, 0], sizes = [1, 32], strides = [1, 1]} : vector<1x384xf32> to vector<1x32xf32>
    %17 = vector.extract_strided_slice %15 {offsets = [0, 0], sizes = [1, 32], strides = [1, 1]} : vector<1x384xf32> to vector<1x32xf32>
    %18 = arith.addf %16, %17 : vector<1x32xf32>
    %19 = arith.negf %18 : vector<1x32xf32>
    %20 = math.exp %19 : vector<1x32xf32>
    %cst_13 = arith.constant 1.000000e+00 : f32
    %21 = vector.broadcast %cst_13 : f32 to vector<1x32xf32>
    %22 = arith.addf %21, %20 : vector<1x32xf32>
    %23 = arith.divf %21, %22 : vector<1x32xf32>
    %24 = vector.extract_strided_slice %13 {offsets = [0, 128], sizes = [1, 32], strides = [1, 1]} : vector<1x384xf32> to vector<1x32xf32>
    %25 = vector.extract_strided_slice %15 {offsets = [0, 128], sizes = [1, 32], strides = [1, 1]} : vector<1x384xf32> to vector<1x32xf32>
    %26 = arith.addf %24, %25 : vector<1x32xf32>
    %27 = arith.negf %26 : vector<1x32xf32>
    %28 = math.exp %27 : vector<1x32xf32>
    %cst_14 = arith.constant 1.000000e+00 : f32
    %29 = vector.broadcast %cst_14 : f32 to vector<1x32xf32>
    %30 = arith.addf %29, %28 : vector<1x32xf32>
    %31 = arith.divf %29, %30 : vector<1x32xf32>
    %32 = vector.extract_strided_slice %13 {offsets = [0, 256], sizes = [1, 32], strides = [1, 1]} : vector<1x384xf32> to vector<1x32xf32>
    %33 = vector.extract_strided_slice %15 {offsets = [0, 256], sizes = [1, 32], strides = [1, 1]} : vector<1x384xf32> to vector<1x32xf32>
    %34 = arith.mulf %23, %33 : vector<1x32xf32>
    %35 = arith.addf %32, %34 : vector<1x32xf32>
    %36 = math.tanh %35 : vector<1x32xf32>
    %cst_15 = arith.constant 1.000000e+00 : f32
    %37 = vector.broadcast %cst_15 : f32 to vector<1x32xf32>
    %38 = arith.subf %37, %31 : vector<1x32xf32>
    %39 = arith.mulf %38, %36 : vector<1x32xf32>
    %40 = arith.mulf %31, %11 : vector<1x32xf32>
    %41 = arith.addf %39, %40 : vector<1x32xf32>
    %42 = arith.index_cast %c0_i32 : i32 to index
    %c0_16 = arith.constant 0 : index
    %43 = vector.load %arg4[%42, %c0_16] : memref<8x32xf32, #tpu.memory_space<vmem>>, vector<1x32xf32>
    tpu.vector_store %arg4[%42, %c0_16], %41 {strides = array<i32>} : memref<8x32xf32, #tpu.memory_space<vmem>>, vector<1x32xf32>,
    %c1_i32 = arith.constant 1 : i32
    %44 = arith.index_cast %c1_i32 : i32 to index
    %c0_17 = arith.constant 0 : index
    %45 = vector.load %arg3[%44, %c0_17] : memref<8x384xf32, #tpu.memory_space<vmem>>, vector<1x384xf32>
    %cst_18 = arith.constant dense<0.000000e+00> : vector<1x384xf32>
    %46 = tpu.matmul %41, %1, %cst_18 {dimension_numbers = #tpu.dot_dimension_numbers<[1], [0], [0], [1], [0, 0, 1, 1], [], []>} : vector<1x32xf32>, vector<32x384xf32>, vector<1x384xf32> -> vector<1x384xf32>
    %47 = arith.addf %46, %3 : vector<1x384xf32>
    %48 = vector.extract_strided_slice %45 {offsets = [0, 0], sizes = [1, 32], strides = [1, 1]} : vector<1x384xf32> to vector<1x32xf32>
    %49 = vector.extract_strided_slice %47 {offsets = [0, 0], sizes = [1, 32], strides = [1, 1]} : vector<1x384xf32> to vector<1x32xf32>
    %50 = arith.addf %48, %49 : vector<1x32xf32>
    %51 = arith.negf %50 : vector<1x32xf32>
    %52 = math.exp %51 : vector<1x32xf32>
    %cst_19 = arith.constant 1.000000e+00 : f32
    %53 = vector.broadcast %cst_19 : f32 to vector<1x32xf32>
    %54 = arith.addf %53, %52 : vector<1x32xf32>
    %55 = arith.divf %53, %54 : vector<1x32xf32>
    %56 = vector.extract_strided_slice %45 {offsets = [0, 128], sizes = [1, 32], strides = [1, 1]} : vector<1x384xf32> to vector<1x32xf32>
    %57 = vector.extract_strided_slice %47 {offsets = [0, 128], sizes = [1, 32], strides = [1, 1]} : vector<1x384xf32> to vector<1x32xf32>
    %58 = arith.addf %56, %57 : vector<1x32xf32>
    %59 = arith.negf %58 : vector<1x32xf32>
    %60 = math.exp %59 : vector<1x32xf32>
    %cst_20 = arith.constant 1.000000e+00 : f32
    %61 = vector.broadcast %cst_20 : f32 to vector<1x32xf32>
    %62 = arith.addf %61, %60 : vector<1x32xf32>
    %63 = arith.divf %61, %62 : vector<1x32xf32>
    %64 = vector.extract_strided_slice %45 {offsets = [0, 256], sizes = [1, 32], strides = [1, 1]} : vector<1x384xf32> to vector<1x32xf32>
    %65 = vector.extract_strided_slice %47 {offsets = [0, 256], sizes = [1, 32], strides = [1, 1]} : vector<1x384xf32> to vector<1x32xf32>
    %66 = arith.mulf %55, %65 : vector<1x32xf32>
    %67 = arith.addf %64, %66 : vector<1x32xf32>
    %68 = math.tanh %67 : vector<1x32xf32>
    %cst_21 = arith.constant 1.000000e+00 : f32
    %69 = vector.broadcast %cst_21 : f32 to vector<1x32xf32>
    %70 = arith.subf %69, %63 : vector<1x32xf32>
    %71 = arith.mulf %70, %68 : vector<1x32xf32>
    %72 = arith.mulf %63, %41 : vector<1x32xf32>
    %73 = arith.addf %71, %72 : vector<1x32xf32>
    %74 = arith.index_cast %c1_i32 : i32 to index
    %c0_22 = arith.constant 0 : index
    %75 = vector.load %arg4[%74, %c0_22] : memref<8x32xf32, #tpu.memory_space<vmem>>, vector<1x32xf32>
    tpu.vector_store %arg4[%74, %c0_22], %73 {strides = array<i32>} : memref<8x32xf32, #tpu.memory_space<vmem>>, vector<1x32xf32>,
    %c2_i32 = arith.constant 2 : i32
    %76 = arith.index_cast %c2_i32 : i32 to index
    %c0_23 = arith.constant 0 : index
    %77 = vector.load %arg3[%76, %c0_23] : memref<8x384xf32, #tpu.memory_space<vmem>>, vector<1x384xf32>
    %cst_24 = arith.constant dense<0.000000e+00> : vector<1x384xf32>
    %78 = tpu.matmul %73, %1, %cst_24 {dimension_numbers = #tpu.dot_dimension_numbers<[1], [0], [0], [1], [0, 0, 1, 1], [], []>} : vector<1x32xf32>, vector<32x384xf32>, vector<1x384xf32> -> vector<1x384xf32>
    %79 = arith.addf %78, %3 : vector<1x384xf32>
    %80 = vector.extract_strided_slice %77 {offsets = [0, 0], sizes = [1, 32], strides = [1, 1]} : vector<1x384xf32> to vector<1x32xf32>
    %81 = vector.extract_strided_slice %79 {offsets = [0, 0], sizes = [1, 32], strides = [1, 1]} : vector<1x384xf32> to vector<1x32xf32>
    %82 = arith.addf %80, %81 : vector<1x32xf32>
    %83 = arith.negf %82 : vector<1x32xf32>
    %84 = math.exp %83 : vector<1x32xf32>
    %cst_25 = arith.constant 1.000000e+00 : f32
    %85 = vector.broadcast %cst_25 : f32 to vector<1x32xf32>
    %86 = arith.addf %85, %84 : vector<1x32xf32>
    %87 = arith.divf %85, %86 : vector<1x32xf32>
    %88 = vector.extract_strided_slice %77 {offsets = [0, 128], sizes = [1, 32], strides = [1, 1]} : vector<1x384xf32> to vector<1x32xf32>
    %89 = vector.extract_strided_slice %79 {offsets = [0, 128], sizes = [1, 32], strides = [1, 1]} : vector<1x384xf32> to vector<1x32xf32>
    %90 = arith.addf %88, %89 : vector<1x32xf32>
    %91 = arith.negf %90 : vector<1x32xf32>
    %92 = math.exp %91 : vector<1x32xf32>
    %cst_26 = arith.constant 1.000000e+00 : f32
    %93 = vector.broadcast %cst_26 : f32 to vector<1x32xf32>
    %94 = arith.addf %93, %92 : vector<1x32xf32>
    %95 = arith.divf %93, %94 : vector<1x32xf32>
    %96 = vector.extract_strided_slice %77 {offsets = [0, 256], sizes = [1, 32], strides = [1, 1]} : vector<1x384xf32> to vector<1x32xf32>
    %97 = vector.extract_strided_slice %79 {offsets = [0, 256], sizes = [1, 32], strides = [1, 1]} : vector<1x384xf32> to vector<1x32xf32>
    %98 = arith.mulf %87, %97 : vector<1x32xf32>
    %99 = arith.addf %96, %98 : vector<1x32xf32>
    %100 = math.tanh %99 : vector<1x32xf32>
    %cst_27 = arith.constant 1.000000e+00 : f32
    %101 = vector.broadcast %cst_27 : f32 to vector<1x32xf32>
    %102 = arith.subf %101, %95 : vector<1x32xf32>
    %103 = arith.mulf %102, %100 : vector<1x32xf32>
    %104 = arith.mulf %95, %73 : vector<1x32xf32>
    %105 = arith.addf %103, %104 : vector<1x32xf32>
    %106 = arith.index_cast %c2_i32 : i32 to index
    %c0_28 = arith.constant 0 : index
    %107 = vector.load %arg4[%106, %c0_28] : memref<8x32xf32, #tpu.memory_space<vmem>>, vector<1x32xf32>
    tpu.vector_store %arg4[%106, %c0_28], %105 {strides = array<i32>} : memref<8x32xf32, #tpu.memory_space<vmem>>, vector<1x32xf32>,
    %c3_i32 = arith.constant 3 : i32
    %108 = arith.index_cast %c3_i32 : i32 to index
    %c0_29 = arith.constant 0 : index
    %109 = vector.load %arg3[%108, %c0_29] : memref<8x384xf32, #tpu.memory_space<vmem>>, vector<1x384xf32>
    %cst_30 = arith.constant dense<0.000000e+00> : vector<1x384xf32>
    %110 = tpu.matmul %105, %1, %cst_30 {dimension_numbers = #tpu.dot_dimension_numbers<[1], [0], [0], [1], [0, 0, 1, 1], [], []>} : vector<1x32xf32>, vector<32x384xf32>, vector<1x384xf32> -> vector<1x384xf32>
    %111 = arith.addf %110, %3 : vector<1x384xf32>
    %112 = vector.extract_strided_slice %109 {offsets = [0, 0], sizes = [1, 32], strides = [1, 1]} : vector<1x384xf32> to vector<1x32xf32>
    %113 = vector.extract_strided_slice %111 {offsets = [0, 0], sizes = [1, 32], strides = [1, 1]} : vector<1x384xf32> to vector<1x32xf32>
    %114 = arith.addf %112, %113 : vector<1x32xf32>
    %115 = arith.negf %114 : vector<1x32xf32>
    %116 = math.exp %115 : vector<1x32xf32>
    %cst_31 = arith.constant 1.000000e+00 : f32
    %117 = vector.broadcast %cst_31 : f32 to vector<1x32xf32>
    %118 = arith.addf %117, %116 : vector<1x32xf32>
    %119 = arith.divf %117, %118 : vector<1x32xf32>
    %120 = vector.extract_strided_slice %109 {offsets = [0, 128], sizes = [1, 32], strides = [1, 1]} : vector<1x384xf32> to vector<1x32xf32>
    %121 = vector.extract_strided_slice %111 {offsets = [0, 128], sizes = [1, 32], strides = [1, 1]} : vector<1x384xf32> to vector<1x32xf32>
    %122 = arith.addf %120, %121 : vector<1x32xf32>
    %123 = arith.negf %122 : vector<1x32xf32>
    %124 = math.exp %123 : vector<1x32xf32>
    %cst_32 = arith.constant 1.000000e+00 : f32
    %125 = vector.broadcast %cst_32 : f32 to vector<1x32xf32>
    %126 = arith.addf %125, %124 : vector<1x32xf32>
    %127 = arith.divf %125, %126 : vector<1x32xf32>
    %128 = vector.extract_strided_slice %109 {offsets = [0, 256], sizes = [1, 32], strides = [1, 1]} : vector<1x384xf32> to vector<1x32xf32>
    %129 = vector.extract_strided_slice %111 {offsets = [0, 256], sizes = [1, 32], strides = [1, 1]} : vector<1x384xf32> to vector<1x32xf32>
    %130 = arith.mulf %119, %129 : vector<1x32xf32>
    %131 = arith.addf %128, %130 : vector<1x32xf32>
    %132 = math.tanh %131 : vector<1x32xf32>
    %cst_33 = arith.constant 1.000000e+00 : f32
    %133 = vector.broadcast %cst_33 : f32 to vector<1x32xf32>
    %134 = arith.subf %133, %127 : vector<1x32xf32>
    %135 = arith.mulf %134, %132 : vector<1x32xf32>
    %136 = arith.mulf %127, %105 : vector<1x32xf32>
    %137 = arith.addf %135, %136 : vector<1x32xf32>
    %138 = arith.index_cast %c3_i32 : i32 to index
    %c0_34 = arith.constant 0 : index
    %139 = vector.load %arg4[%138, %c0_34] : memref<8x32xf32, #tpu.memory_space<vmem>>, vector<1x32xf32>
    tpu.vector_store %arg4[%138, %c0_34], %137 {strides = array<i32>} : memref<8x32xf32, #tpu.memory_space<vmem>>, vector<1x32xf32>,
    %c4_i32 = arith.constant 4 : i32
    %140 = arith.index_cast %c4_i32 : i32 to index
    %c0_35 = arith.constant 0 : index
    %141 = vector.load %arg3[%140, %c0_35] : memref<8x384xf32, #tpu.memory_space<vmem>>, vector<1x384xf32>
    %cst_36 = arith.constant dense<0.000000e+00> : vector<1x384xf32>
    %142 = tpu.matmul %137, %1, %cst_36 {dimension_numbers = #tpu.dot_dimension_numbers<[1], [0], [0], [1], [0, 0, 1, 1], [], []>} : vector<1x32xf32>, vector<32x384xf32>, vector<1x384xf32> -> vector<1x384xf32>
    %143 = arith.addf %142, %3 : vector<1x384xf32>
    %144 = vector.extract_strided_slice %141 {offsets = [0, 0], sizes = [1, 32], strides = [1, 1]} : vector<1x384xf32> to vector<1x32xf32>
    %145 = vector.extract_strided_slice %143 {offsets = [0, 0], sizes = [1, 32], strides = [1, 1]} : vector<1x384xf32> to vector<1x32xf32>
    %146 = arith.addf %144, %145 : vector<1x32xf32>
    %147 = arith.negf %146 : vector<1x32xf32>
    %148 = math.exp %147 : vector<1x32xf32>
    %cst_37 = arith.constant 1.000000e+00 : f32
    %149 = vector.broadcast %cst_37 : f32 to vector<1x32xf32>
    %150 = arith.addf %149, %148 : vector<1x32xf32>
    %151 = arith.divf %149, %150 : vector<1x32xf32>
    %152 = vector.extract_strided_slice %141 {offsets = [0, 128], sizes = [1, 32], strides = [1, 1]} : vector<1x384xf32> to vector<1x32xf32>
    %153 = vector.extract_strided_slice %143 {offsets = [0, 128], sizes = [1, 32], strides = [1, 1]} : vector<1x384xf32> to vector<1x32xf32>
    %154 = arith.addf %152, %153 : vector<1x32xf32>
    %155 = arith.negf %154 : vector<1x32xf32>
    %156 = math.exp %155 : vector<1x32xf32>
    %cst_38 = arith.constant 1.000000e+00 : f32
    %157 = vector.broadcast %cst_38 : f32 to vector<1x32xf32>
    %158 = arith.addf %157, %156 : vector<1x32xf32>
    %159 = arith.divf %157, %158 : vector<1x32xf32>
    %160 = vector.extract_strided_slice %141 {offsets = [0, 256], sizes = [1, 32], strides = [1, 1]} : vector<1x384xf32> to vector<1x32xf32>
    %161 = vector.extract_strided_slice %143 {offsets = [0, 256], sizes = [1, 32], strides = [1, 1]} : vector<1x384xf32> to vector<1x32xf32>
    %162 = arith.mulf %151, %161 : vector<1x32xf32>
    %163 = arith.addf %160, %162 : vector<1x32xf32>
    %164 = math.tanh %163 : vector<1x32xf32>
    %cst_39 = arith.constant 1.000000e+00 : f32
    %165 = vector.broadcast %cst_39 : f32 to vector<1x32xf32>
    %166 = arith.subf %165, %159 : vector<1x32xf32>
    %167 = arith.mulf %166, %164 : vector<1x32xf32>
    %168 = arith.mulf %159, %137 : vector<1x32xf32>
    %169 = arith.addf %167, %168 : vector<1x32xf32>
    %170 = arith.index_cast %c4_i32 : i32 to index
    %c0_40 = arith.constant 0 : index
    %171 = vector.load %arg4[%170, %c0_40] : memref<8x32xf32, #tpu.memory_space<vmem>>, vector<1x32xf32>
    tpu.vector_store %arg4[%170, %c0_40], %169 {strides = array<i32>} : memref<8x32xf32, #tpu.memory_space<vmem>>, vector<1x32xf32>,
    %c5_i32 = arith.constant 5 : i32
    %172 = arith.index_cast %c5_i32 : i32 to index
    %c0_41 = arith.constant 0 : index
    %173 = vector.load %arg3[%172, %c0_41] : memref<8x384xf32, #tpu.memory_space<vmem>>, vector<1x384xf32>
    %cst_42 = arith.constant dense<0.000000e+00> : vector<1x384xf32>
    %174 = tpu.matmul %169, %1, %cst_42 {dimension_numbers = #tpu.dot_dimension_numbers<[1], [0], [0], [1], [0, 0, 1, 1], [], []>} : vector<1x32xf32>, vector<32x384xf32>, vector<1x384xf32> -> vector<1x384xf32>
    %175 = arith.addf %174, %3 : vector<1x384xf32>
    %176 = vector.extract_strided_slice %173 {offsets = [0, 0], sizes = [1, 32], strides = [1, 1]} : vector<1x384xf32> to vector<1x32xf32>
    %177 = vector.extract_strided_slice %175 {offsets = [0, 0], sizes = [1, 32], strides = [1, 1]} : vector<1x384xf32> to vector<1x32xf32>
    %178 = arith.addf %176, %177 : vector<1x32xf32>
    %179 = arith.negf %178 : vector<1x32xf32>
    %180 = math.exp %179 : vector<1x32xf32>
    %cst_43 = arith.constant 1.000000e+00 : f32
    %181 = vector.broadcast %cst_43 : f32 to vector<1x32xf32>
    %182 = arith.addf %181, %180 : vector<1x32xf32>
    %183 = arith.divf %181, %182 : vector<1x32xf32>
    %184 = vector.extract_strided_slice %173 {offsets = [0, 128], sizes = [1, 32], strides = [1, 1]} : vector<1x384xf32> to vector<1x32xf32>
    %185 = vector.extract_strided_slice %175 {offsets = [0, 128], sizes = [1, 32], strides = [1, 1]} : vector<1x384xf32> to vector<1x32xf32>
    %186 = arith.addf %184, %185 : vector<1x32xf32>
    %187 = arith.negf %186 : vector<1x32xf32>
    %188 = math.exp %187 : vector<1x32xf32>
    %cst_44 = arith.constant 1.000000e+00 : f32
    %189 = vector.broadcast %cst_44 : f32 to vector<1x32xf32>
    %190 = arith.addf %189, %188 : vector<1x32xf32>
    %191 = arith.divf %189, %190 : vector<1x32xf32>
    %192 = vector.extract_strided_slice %173 {offsets = [0, 256], sizes = [1, 32], strides = [1, 1]} : vector<1x384xf32> to vector<1x32xf32>
    %193 = vector.extract_strided_slice %175 {offsets = [0, 256], sizes = [1, 32], strides = [1, 1]} : vector<1x384xf32> to vector<1x32xf32>
    %194 = arith.mulf %183, %193 : vector<1x32xf32>
    %195 = arith.addf %192, %194 : vector<1x32xf32>
    %196 = math.tanh %195 : vector<1x32xf32>
    %cst_45 = arith.constant 1.000000e+00 : f32
    %197 = vector.broadcast %cst_45 : f32 to vector<1x32xf32>
    %198 = arith.subf %197, %191 : vector<1x32xf32>
    %199 = arith.mulf %198, %196 : vector<1x32xf32>
    %200 = arith.mulf %191, %169 : vector<1x32xf32>
    %201 = arith.addf %199, %200 : vector<1x32xf32>
    %202 = arith.index_cast %c5_i32 : i32 to index
    %c0_46 = arith.constant 0 : index
    %203 = vector.load %arg4[%202, %c0_46] : memref<8x32xf32, #tpu.memory_space<vmem>>, vector<1x32xf32>
    tpu.vector_store %arg4[%202, %c0_46], %201 {strides = array<i32>} : memref<8x32xf32, #tpu.memory_space<vmem>>, vector<1x32xf32>,
    %c6_i32 = arith.constant 6 : i32
    %204 = arith.index_cast %c6_i32 : i32 to index
    %c0_47 = arith.constant 0 : index
    %205 = vector.load %arg3[%204, %c0_47] : memref<8x384xf32, #tpu.memory_space<vmem>>, vector<1x384xf32>
    %cst_48 = arith.constant dense<0.000000e+00> : vector<1x384xf32>
    %206 = tpu.matmul %201, %1, %cst_48 {dimension_numbers = #tpu.dot_dimension_numbers<[1], [0], [0], [1], [0, 0, 1, 1], [], []>} : vector<1x32xf32>, vector<32x384xf32>, vector<1x384xf32> -> vector<1x384xf32>
    %207 = arith.addf %206, %3 : vector<1x384xf32>
    %208 = vector.extract_strided_slice %205 {offsets = [0, 0], sizes = [1, 32], strides = [1, 1]} : vector<1x384xf32> to vector<1x32xf32>
    %209 = vector.extract_strided_slice %207 {offsets = [0, 0], sizes = [1, 32], strides = [1, 1]} : vector<1x384xf32> to vector<1x32xf32>
    %210 = arith.addf %208, %209 : vector<1x32xf32>
    %211 = arith.negf %210 : vector<1x32xf32>
    %212 = math.exp %211 : vector<1x32xf32>
    %cst_49 = arith.constant 1.000000e+00 : f32
    %213 = vector.broadcast %cst_49 : f32 to vector<1x32xf32>
    %214 = arith.addf %213, %212 : vector<1x32xf32>
    %215 = arith.divf %213, %214 : vector<1x32xf32>
    %216 = vector.extract_strided_slice %205 {offsets = [0, 128], sizes = [1, 32], strides = [1, 1]} : vector<1x384xf32> to vector<1x32xf32>
    %217 = vector.extract_strided_slice %207 {offsets = [0, 128], sizes = [1, 32], strides = [1, 1]} : vector<1x384xf32> to vector<1x32xf32>
    %218 = arith.addf %216, %217 : vector<1x32xf32>
    %219 = arith.negf %218 : vector<1x32xf32>
    %220 = math.exp %219 : vector<1x32xf32>
    %cst_50 = arith.constant 1.000000e+00 : f32
    %221 = vector.broadcast %cst_50 : f32 to vector<1x32xf32>
    %222 = arith.addf %221, %220 : vector<1x32xf32>
    %223 = arith.divf %221, %222 : vector<1x32xf32>
    %224 = vector.extract_strided_slice %205 {offsets = [0, 256], sizes = [1, 32], strides = [1, 1]} : vector<1x384xf32> to vector<1x32xf32>
    %225 = vector.extract_strided_slice %207 {offsets = [0, 256], sizes = [1, 32], strides = [1, 1]} : vector<1x384xf32> to vector<1x32xf32>
    %226 = arith.mulf %215, %225 : vector<1x32xf32>
    %227 = arith.addf %224, %226 : vector<1x32xf32>
    %228 = math.tanh %227 : vector<1x32xf32>
    %cst_51 = arith.constant 1.000000e+00 : f32
    %229 = vector.broadcast %cst_51 : f32 to vector<1x32xf32>
    %230 = arith.subf %229, %223 : vector<1x32xf32>
    %231 = arith.mulf %230, %228 : vector<1x32xf32>
    %232 = arith.mulf %223, %201 : vector<1x32xf32>
    %233 = arith.addf %231, %232 : vector<1x32xf32>
    %234 = arith.index_cast %c6_i32 : i32 to index
    %c0_52 = arith.constant 0 : index
    %235 = vector.load %arg4[%234, %c0_52] : memref<8x32xf32, #tpu.memory_space<vmem>>, vector<1x32xf32>
    tpu.vector_store %arg4[%234, %c0_52], %233 {strides = array<i32>} : memref<8x32xf32, #tpu.memory_space<vmem>>, vector<1x32xf32>,
    %c7_i32 = arith.constant 7 : i32
    %236 = arith.index_cast %c7_i32 : i32 to index
    %c0_53 = arith.constant 0 : index
    %237 = vector.load %arg3[%236, %c0_53] : memref<8x384xf32, #tpu.memory_space<vmem>>, vector<1x384xf32>
    %cst_54 = arith.constant dense<0.000000e+00> : vector<1x384xf32>
    %238 = tpu.matmul %233, %1, %cst_54 {dimension_numbers = #tpu.dot_dimension_numbers<[1], [0], [0], [1], [0, 0, 1, 1], [], []>} : vector<1x32xf32>, vector<32x384xf32>, vector<1x384xf32> -> vector<1x384xf32>
    %239 = arith.addf %238, %3 : vector<1x384xf32>
    %240 = vector.extract_strided_slice %237 {offsets = [0, 0], sizes = [1, 32], strides = [1, 1]} : vector<1x384xf32> to vector<1x32xf32>
    %241 = vector.extract_strided_slice %239 {offsets = [0, 0], sizes = [1, 32], strides = [1, 1]} : vector<1x384xf32> to vector<1x32xf32>
    %242 = arith.addf %240, %241 : vector<1x32xf32>
    %243 = arith.negf %242 : vector<1x32xf32>
    %244 = math.exp %243 : vector<1x32xf32>
    %cst_55 = arith.constant 1.000000e+00 : f32
    %245 = vector.broadcast %cst_55 : f32 to vector<1x32xf32>
    %246 = arith.addf %245, %244 : vector<1x32xf32>
    %247 = arith.divf %245, %246 : vector<1x32xf32>
    %248 = vector.extract_strided_slice %237 {offsets = [0, 128], sizes = [1, 32], strides = [1, 1]} : vector<1x384xf32> to vector<1x32xf32>
    %249 = vector.extract_strided_slice %239 {offsets = [0, 128], sizes = [1, 32], strides = [1, 1]} : vector<1x384xf32> to vector<1x32xf32>
    %250 = arith.addf %248, %249 : vector<1x32xf32>
    %251 = arith.negf %250 : vector<1x32xf32>
    %252 = math.exp %251 : vector<1x32xf32>
    %cst_56 = arith.constant 1.000000e+00 : f32
    %253 = vector.broadcast %cst_56 : f32 to vector<1x32xf32>
    %254 = arith.addf %253, %252 : vector<1x32xf32>
    %255 = arith.divf %253, %254 : vector<1x32xf32>
    %256 = vector.extract_strided_slice %237 {offsets = [0, 256], sizes = [1, 32], strides = [1, 1]} : vector<1x384xf32> to vector<1x32xf32>
    %257 = vector.extract_strided_slice %239 {offsets = [0, 256], sizes = [1, 32], strides = [1, 1]} : vector<1x384xf32> to vector<1x32xf32>
    %258 = arith.mulf %247, %257 : vector<1x32xf32>
    %259 = arith.addf %256, %258 : vector<1x32xf32>
    %260 = math.tanh %259 : vector<1x32xf32>
    %cst_57 = arith.constant 1.000000e+00 : f32
    %261 = vector.broadcast %cst_57 : f32 to vector<1x32xf32>
    %262 = arith.subf %261, %255 : vector<1x32xf32>
    %263 = arith.mulf %262, %260 : vector<1x32xf32>
    %264 = arith.mulf %255, %233 : vector<1x32xf32>
    %265 = arith.addf %263, %264 : vector<1x32xf32>
    %266 = arith.index_cast %c7_i32 : i32 to index
    %c0_58 = arith.constant 0 : index
    %267 = vector.load %arg4[%266, %c0_58] : memref<8x32xf32, #tpu.memory_space<vmem>>, vector<1x32xf32>
    tpu.vector_store %arg4[%266, %c0_58], %265 {strides = array<i32>} : memref<8x32xf32, #tpu.memory_space<vmem>>, vector<1x32xf32>,
    %c8_i32 = arith.constant 8 : i32
    %c0_59 = arith.constant 0 : index
    %c0_60 = arith.constant 0 : index
    %268 = vector.load %arg4[%c0_59, %c0_60] : memref<8x32xf32, #tpu.memory_space<vmem>>, vector<8x32xf32>
    %cst_61 = arith.constant dense<0.000000e+00> : vector<8x128xf32>
    %269 = tpu.matmul %268, %4, %cst_61 {dimension_numbers = #tpu.dot_dimension_numbers<[1], [0], [0], [1], [0, 0, 1, 1], [], []>} : vector<8x32xf32>, vector<32x128xf32>, vector<8x128xf32> -> vector<8x128xf32>
    %270 = vector.broadcast %5 : vector<1x128xf32> to vector<8x128xf32>
    %271 = arith.addf %269, %270 : vector<8x128xf32>
    %272 = tpu.iota {dimensions = array<i32: 1>} : vector<8x128xi32>
    %c4_i32_62 = arith.constant 4 : i32
    %273 = vector.broadcast %c4_i32_62 : i32 to vector<8x128xi32>
    %274 = arith.cmpi slt, %272, %273 : vector<8x128xi32>
    %cst_63 = arith.constant -1.000000e+30 : f32
    %275 = vector.broadcast %cst_63 : f32 to vector<8x128xf32>
    %276 = arith.select %274, %271, %275 : vector<8x128xi1>, vector<8x128xf32>
    %cst_64 = arith.constant dense<0xFF800000> : vector<8xf32>
    %277 = vector.multi_reduction <maximumf>, %276, %cst_64 [1] : vector<8x128xf32> to vector<8xf32>
    %278 = vector.shape_cast %277 : vector<8xf32> to vector<8x1xf32>
    %279 = vector.broadcast %278 : vector<8x1xf32> to vector<8x128xf32>
    %280 = arith.subf %276, %279 : vector<8x128xf32>
    %281 = math.exp %280 : vector<8x128xf32>
    %cst_65 = arith.constant dense<0.000000e+00> : vector<8xf32>
    %282 = vector.multi_reduction <add>, %281, %cst_65 [1] : vector<8x128xf32> to vector<8xf32>
    %283 = vector.shape_cast %282 : vector<8xf32> to vector<8x1xf32>
    %284 = math.log %283 : vector<8x1xf32>
    %285 = vector.broadcast %284 : vector<8x1xf32> to vector<8x128xf32>
    %286 = arith.subf %280, %285 : vector<8x128xf32>
    %c0_66 = arith.constant 0 : index
    %c0_67 = arith.constant 0 : index
    %287 = vector.load %arg2[%c0_66, %c0_67] : memref<8x128xf32, #tpu.memory_space<vmem>>, vector<8x128xf32>
    tpu.vector_store %arg2[%c0_66, %c0_67], %286 {strides = array<i32>} : memref<8x128xf32, #tpu.memory_space<vmem>>, vector<8x128xf32>,
    return
  }
}

</mosaic_0001>

<bundles_post_ra>
// kernel: gru_model_forward.1
= control target key start
LH: loop header
LB: loop body
LE: loop exit
PB: predicated region body
PF: predicated region fallthrough
CT: control target
= control target key end

     0   :  { %7 = vsyncpa [#allocation5], 0  ;;  %s2138_s9 = smov [#allocation4]   ;;  %s2344_s0 = inlined_call_operand.vmem [shape: f32[8,16], index: 0, kind: input, shape index: {}]   ;;  %s2345_s1 = inlined_call_operand.hbm [shape: f32[96,384], index: 1, kind: input, shape index: {}]   ;;  %s2346_s2 = inlined_call_operand.vmem [shape: f32[8,128], index: 2, kind: output, shape index: {}]  }
   0x1   :  { %s15_s10 = sshll.u32 %s2138_s9, 4  ;;  %s2114_s13 = scalar_lea.hbm %s2345_s1, 4608  ;;  %s16_s10 = int_to_ptr.vmem [resolvable:$true] %s15_s10 }
   0x2   :  { %p2115_p0 = scmp.ne.s32.totalorder %s2345_s1, %s2114_s13  ;;  %p2118_p1 = scmp.lt.u32.totalorder %s2114_s13, %s2345_s1 }
   0x4   :  { %p2120_p2 = pnand %p2118_p1, %p2115_p0 }
   0x6   :  { %2123 = shalt.err (!%p2120_p2)
}
   0x7   :  { %s2124_s18 = scalar_lea.vmem %s16_s10, 4608  ;;  %p2129_p4 = scmp.lt.s32.totalorder %s16_s10, %s16_s10 }
   0x8   :  { %p2125_p3 = scmp.ne.s32.totalorder %s16_s10, %s2124_s18  ;;  %p2130_p5 = scmp.lt.s32.totalorder %s2124_s18, %s2124_s18 }
   0xa   :  { %p2131_p6 = por %p2130_p5, %p2129_p4 }
   0xc   :  { %p2132_p7 = pnand %p2131_p6, %p2125_p3 }
   0xe   :  { %2135 = shalt.err (!%p2132_p7)
}
   0xf   :  { %s2139_s19 = smov 384   ;;  %s2140_s20 = smov 24  }
  0x10   :  { %21 = dma.hbm_to_vmem [thread:$0]  %s2345_s1, 4608, %s16_s10, [#allocation5], %s2139_s19, %s2139_s19, %s2140_s20  }
  0x11   :  { %2136 = dma.done.wait [#allocation5], 4608  }
  0x12   :  { %2137 = vsyncadd [#allocation5], 4294962688  ;;  %v2141_v0 = vmov 0.0   ;;  %v26_v1 = vld [vmem:[#allocation4 + $0x8] sm:$0xff]  ;;  %v29_v2 = vld [vmem:[#allocation4 + $0x20] sm:$0xff]  ;;  %vm69_vm0 = vcmask 130048   ;;  %v54_v30 = vlaneseq }
  0x13   :  { %137 = vmatprep.mubr.f32.mxu1 %v2141_v0  ;;  %302 = vmatprep.mubr.f32.mxu0 %v2141_v0  ;;  %v25_v3 = vld [vmem:[#allocation4] sm:$0xff]  ;;  %v1899_v4 = vpack.c.bf16 %v29_v2, %v26_v1  ;;  %v28_v5 = vld [vmem:[#allocation4 + $0x18] sm:$0xff]  ;;  %v27_v6 = vld [vmem:[#allocation4 + $0x10] sm:$0xff]  ;;  %v2142_v21 = vmov 0.0|0.0   ;;  %vm2143_vm1 = vmmov 0   ;;  %vm234_vm2 = vcmask 261120  }
  0x14   :  { %v1901_v7 = vpack.c.bf16 %v28_v5, %v25_v3  ;;  %v52_v8 = vld [vmem:[%s2344_s0] sm:$0xff]  ;;  %v30_v9 = vld [vmem:[#allocation4 + $0x28] sm:$0xff]  ;;  %v32_v10 = vld [vmem:[#allocation4 + $0x38] sm:$0xff]  ;;  %v55_v31 = vshrl.u32 %v54_v30, 7  ;;  %vm405_vm3 = vcmask 253952  }
  0x15   :  { %v35_v11 = vld [vmem:[#allocation4 + $0x50] sm:$0xff]  ;;  %1900 = vmatprep.subr.bf16.mxu1 %v1899_v4  ;;  %v34_v14 = vld [vmem:[#allocation4 + $0x48] sm:$0xff]  ;;  %v1904_v16 = vpack.c.bf16 %v30_v9, %v27_v6  ;;  %v41_v18 = vld [vmem:[#allocation4 + $0x80] sm:$0xff] }
  0x16   :  { %v2176_v12 = vpack.c.bf16 %v35_v11, %v32_v10  ;;  %v31_v13 = vld [vmem:[#allocation4 + $0x30] sm:$0xff]  ;;  %v38_v15 = vld [vmem:[#allocation4 + $0x68] sm:$0xff]  ;;  %1902 = vmatpush1.bf16.msra.mxu1 %v1901_v7  ;;  %v37_v19 = vld [vmem:[#allocation4 + $0x60] sm:$0xff]  ;;  %v56_v32 = vsub.s32 0, %v55_v31  ;;  %v60_v34 = vsub.s32 1, %v55_v31  ;;  %v64_v36 = vsub.s32 2, %v55_v31 }
  0x17   :  { %v2178_v17 = vpack.c.bf16 %v34_v14, %v31_v13  ;;  %v40_v20 = vld [vmem:[#allocation4 + $0x78] sm:$0xff]  ;;  %1903 = vmatprep.subr.bf16.mxu1 %v2142_v21  ;;  %v2182_v22 = vpack.c.bf16 %v41_v18, %v38_v15  ;;  %v33_v23 = vld [vmem:[#allocation4 + $0x40] sm:$0xff]  ;;  %v39_v27 = vld [vmem:[#allocation4 + $0x70] sm:$0xff] }
  0x18   :  { %1907 = vmatprep.subr.bf16.mxu0 %v2176_v12  ;;  %v36_v24 = vld [vmem:[#allocation4 + $0x58] sm:$0xff]  ;;  %v2185_v25 = vpack.c.bf16 %v40_v20, %v37_v19  ;;  %v42_v28 = vld [vmem:[#allocation4 + $0x88] sm:$0xff] }
  0x19   :  { %1909 = vmatpush1.bf16.msra.mxu0 %v2178_v17  ;;  %1712 = vmatmul.mubr.msk.f32.vlgmr.msra.gmra.mrb[0].mxu1 %vm69_vm0, %v52_v8  ;;  %v2191_v26 = vpack.c.bf16 %v36_v24, %v33_v23  ;;  %v2198_v29 = vpack.c.bf16 %v42_v28, %v39_v27  ;;  %v44_v33 = vld [vmem:[#allocation4 + $0x90] ss:$8 sm:$0x7]  ;;  %v46_v43 = vld [vmem:[#allocation4 + $0x91] ss:$8 sm:$0x7] }
  0x1a   :  { %1911 = vmatprep.subr.bf16.mxu0 %v2182_v22  ;;  %1905 = vmatpush3.bf16.msra.mxu1 %v1904_v16  ;;  %v57_v35 = vrot.slane %v44_v33, %v56_v32  ;;  %v61_v37 = vrot.slane %v44_v33, %v60_v34  ;;  %v65_v41 = vrot.slane %v44_v33, %v64_v36 }
  0x1b   :  { %1797 = vmatprep.mubr.msk.f32.mxu1 %vm2143_vm1, %v2141_v0  ;;  %1914 = vmatprep.subr.bf16.mxu1 %v2142_v21  ;;  %v2219_v48 = vrot.slane %v46_v43, %v56_v32  ;;  %v2222_v51 = vrot.slane %v46_v43, %v60_v34  ;;  %v2225_v63 = vrot.slane %v46_v43, %v64_v36 }
  0x1d   :  { %1913 = vmatpush1.bf16.msra.mxu0 %v2185_v25  ;;  %1798 = vmatmul.mubr.msk.f32.vlgmr.msra.gmra.mrb[2].mxu1 %vm69_vm0, %v52_v8 }
  0x1e   :  { %1921 = vmatprep.subr.bf16.mxu0 %v2176_v12  ;;  %1916 = vmatpush3.bf16.msra.mxu1 %v2191_v26 }
  0x1f   :  { %1808 = vmatprep.mubr.msk.f32.mxu1 %vm2143_vm1, %v2141_v0  ;;  %1917 = vmatprep.subr.bf16.mxu1 %v2142_v21 }
  0x20   :  { %303 = vmatmul.mubr.f32.vlgmr.msra.gmra.mrb[0].mxu0 %v2141_v0 }
  0x21   :  { %1923 = vmatpush1.bf16.msra.mxu0 %v2178_v17  ;;  %476 = vmatprep.mubr.f32.mxu0 %v2141_v0 }
  0x22   :  { %1925 = vmatprep.subr.bf16.mxu0 %v2182_v22  ;;  %1919 = vmatpush3.bf16.msra.mxu1 %v2198_v29 }
  0x23   :  { %1928 = vmatprep.subr.bf16.mxu1 %v2142_v21 }
  0x25   :  { %1927 = vmatpush1.bf16.msra.mxu0 %v2185_v25  ;;  %1809 = vmatmul.mubr.f32.vlgmr.msra.gmra.mrb[4].mxu1 %v2141_v0 }
  0x26   :  { %1935 = vmatprep.subr.bf16.mxu0 %v2176_v12  ;;  %1930 = vmatpush3.bf16.msra.mxu1 %v2191_v26 }
  0x27   :  { %1819 = vmatprep.mubr.msk.f32.mxu1 %vm2143_vm1, %v2141_v0  ;;  %1931 = vmatprep.subr.bf16.mxu1 %v2142_v21 }
  0x2a   :  { %1933 = vmatpush3.bf16.msra.mxu1 %v2198_v29 }
  0x2b   :  { %1942 = vmatprep.subr.bf16.mxu1 %v2142_v21 }
  0xec   :  { %v139_v38 = vpop.f32.mrb[0].mxu1 }
  0xed   :  { %v140_v39 = vadd.f32 %v139_v38, %v57_v35  ;;  %v141_v40 = vpop.f32.mrb[1].mxu1 }
  0xee   :  { %v142_v42 = vadd.f32 %v141_v40, %v61_v37 }
  0xef   :  { %214 = vst [vmem:[#allocation2] sm:$0xff] %v140_v39 }
  0xf0   :  { %215 = vst [vmem:[#allocation2 + $0x8] sm:$0xff] %v142_v42  ;;  %v210_v44 = vpop.f32.mrb[2].mxu1 }
  0xf1   :  { %v211_v45 = vadd.f32 %v210_v44, %v65_v41  ;;  %v1799_v46 = vpop.f32.mrb[3].mxu1 }
  0xf3   :  { %v304_v47 = vpop.f32.mrb[0].mxu0  ;;  %216 = vst [vmem:[#allocation2 + $0x10] sm:$0xff] %v211_v45 }
  0xf4   :  { %v306_v49 = vpop.f32.mrb[1].mxu0  ;;  %v305_v50 = vadd.f32 %v304_v47, %v2219_v48 }
  0xf5   :  { %v307_v57 = vadd.f32 %v306_v49, %v2222_v51 }
  0xf8   :  { %v375_v52 = vpop.f32.mrb[4].mxu1 }
  0xf9   :  { %v1810_v53 = vpop.f32.mrb[5].mxu1  ;;  %v376_v3 = vadd.f32 %v375_v52, %v2225_v63 }
  0xfa   :  { %v217_v54 = vld [vmem:[#allocation2] ss:$8 sm:$0x7]  ;;  %v408_v18 = vld [vmem:[#allocation2 + $0x1] ss:$8 sm:$0x7] }
  0xfb   :  { %v379_v55 = vadd.f32 %v305_v50, %v217_v54  ;;  %v387_v56 = vrot.slane %v217_v54, 1  ;;  %v397_v6 = vrot.slane %v217_v54, 2  ;;  %v561_v28 = vrot.slane %v408_v18, 1  ;;  %v581_v53 = vld [vmem:[#allocation2 + $0x2] ss:$8 sm:$0x7] }
  0xfc   :  { %v571_v41 = vrot.slane %v408_v18, 2 }
  0xfd   :  { %v1714_v58 = vmul.f32 -1.442695, %v379_v55  ;;  %v389_v59 = vadd.f32 %v387_v56, %v307_v57 }
  0xff   :  { %2030 = vpow2.f32 %v1714_v58  ;;  %v1715_v60 = vmul.f32 -1.442695, %v389_v59  ;;  %v734_v59 = vrot.slane %v581_v53, 1 }
 0x101   :  { %2032 = vpow2.f32 %v1715_v60 }
 0x109   :  { %v2031_v61 = vpop.eup %2030 }
 0x10a   :  { %v383_v62 = vadd.f32 1.0, %v2031_v61 }
 0x10b   :  { %v2033_v1 = vpop.eup %2032 }
 0x10c   :  { %2034 = vrcp.f32 %v383_v62  ;;  %v393_v2 = vadd.f32 1.0, %v2033_v1 }
 0x10e   :  { %2036 = vrcp.f32 %v393_v2 }
 0x116   :  { %v2035_v4 = vpop.eup %2034 }
 0x117   :  { %v396_v5 = vmul.f32 %v2035_v4, %v376_v3 }
 0x118   :  { %v2037_v8 = vpop.eup %2036 }
 0x119   :  { %v399_v7 = vadd.f32 %v397_v6, %v396_v5  ;;  %v401_v9 = vsub.f32 1.0, %v2037_v8  ;;  %v403_v13 = vmul.f32 0.0, %v2037_v8  ;;  %v744_v8 = vrot.slane %v581_v53, 2 }
 0x11b   :  { %2038 = vtanh.f32 %v399_v7 }
 0x125   :  { %v2039_v10 = vpop.eup %2038 }
 0x126   :  { %v402_v11 = vmul.f32 %v2039_v10, %v401_v9 }
 0x128   :  { %v404_v14 = vadd.f32 %v403_v13, %v402_v11 }
 0x12a   :  { %406 = vst.msk [vmem:[#allocation3] sm:$0x1] %vm405_vm3, %v404_v14  ;;  %1716 = vmatmul.mubr.msk.f32.vlgmr.msra.gmra.mrb[2].mxu0 %vm234_vm2, %v404_v14  ;;  %1820 = vmatmul.mubr.msk.f32.vlgmr.msra.gmra.mrb[6].mxu1 %vm234_vm2, %v404_v14 }
 0x12b   :  { %1937 = vmatpush1.bf16.msra.mxu0 %v2178_v17  ;;  %1944 = vmatpush3.bf16.msra.mxu1 %v2191_v26 }
 0x12c   :  { %1939 = vmatprep.subr.bf16.mxu0 %v2182_v22  ;;  %1945 = vmatprep.subr.bf16.mxu1 %v2142_v21 }
 0x12d   :  { %649 = vmatprep.mubr.f32.mxu0 %v2141_v0  ;;  %1830 = vmatprep.mubr.msk.f32.mxu1 %vm2143_vm1, %v2141_v0 }
 0x12f   :  { %1941 = vmatpush1.bf16.msra.mxu0 %v2185_v25  ;;  %1947 = vmatpush3.bf16.msra.mxu1 %v2198_v29 }
 0x130   :  { %1949 = vmatprep.subr.bf16.mxu0 %v2176_v12  ;;  %1956 = vmatprep.subr.bf16.mxu1 %v2142_v21 }
 0x1fd   :  { %v478_v15 = vpop.f32.mrb[2].mxu0  ;;  %v549_v16 = vpop.f32.mrb[6].mxu1 }
 0x1fe   :  { %v479_v19 = vadd.f32 %v478_v15, %v2219_v48  ;;  %v480_v20 = vpop.f32.mrb[3].mxu0  ;;  %v1821_v23 = vpop.f32.mrb[7].mxu1  ;;  %v550_v38 = vadd.f32 %v549_v16, %v2225_v63 }
 0x1ff   :  { %v481_v24 = vadd.f32 %v480_v20, %v2222_v51  ;;  %v754_v20 = vld [vmem:[#allocation2 + $0x3] ss:$8 sm:$0x7] }
 0x200   :  { %v553_v27 = vadd.f32 %v479_v19, %v408_v18 }
 0x201   :  { %v563_v32 = vadd.f32 %v561_v28, %v481_v24 }
 0x202   :  { %v1718_v31 = vmul.f32 -1.442695, %v553_v27 }
 0x203   :  { %v1719_v33 = vmul.f32 -1.442695, %v563_v32  ;;  %v907_v32 = vrot.slane %v754_v20, 1 }
 0x204   :  { %2040 = vpow2.f32 %v1718_v31 }
 0x205   :  { %2042 = vpow2.f32 %v1719_v33 }
 0x20e   :  { %v2041_v34 = vpop.eup %2040 }
 0x20f   :  { %v557_v35 = vadd.f32 1.0, %v2041_v34  ;;  %v2043_v36 = vpop.eup %2042 }
 0x210   :  { %v567_v37 = vadd.f32 1.0, %v2043_v36 }
 0x211   :  { %2044 = vrcp.f32 %v557_v35 }
 0x212   :  { %2046 = vrcp.f32 %v567_v37 }
 0x21b   :  { %v2045_v39 = vpop.eup %2044 }
 0x21c   :  { %v570_v40 = vmul.f32 %v2045_v39, %v550_v38  ;;  %v2047_v43 = vpop.eup %2046 }
 0x21d   :  { %v575_v44 = vsub.f32 1.0, %v2047_v43  ;;  %v577_v47 = vmul.f32 %v2047_v43, %v404_v14  ;;  %v917_v43 = vrot.slane %v754_v20, 2 }
 0x21e   :  { %v573_v42 = vadd.f32 %v571_v41, %v570_v40 }
 0x220   :  { %2048 = vtanh.f32 %v573_v42 }
 0x22a   :  { %v2049_v45 = vpop.eup %2048 }
 0x22b   :  { %v576_v46 = vmul.f32 %v2049_v45, %v575_v44 }
 0x22d   :  { %v578_v49 = vadd.f32 %v577_v47, %v576_v46 }
 0x22f   :  { %579 = vst.msk [vmem:[#allocation3 + $0x1] sm:$0x1] %vm405_vm3, %v578_v49  ;;  %1720 = vmatmul.mubr.msk.f32.vlgmr.msra.gmra.mrb[4].mxu0 %vm234_vm2, %v578_v49  ;;  %1831 = vmatmul.mubr.msk.f32.vlgmr.msra.gmra.mrb[8].mxu1 %vm234_vm2, %v578_v49 }
 0x230   :  { %1951 = vmatpush1.bf16.msra.mxu0 %v2178_v17  ;;  %1958 = vmatpush3.bf16.msra.mxu1 %v2191_v26 }
 0x231   :  { %1953 = vmatprep.subr.bf16.mxu0 %v2182_v22  ;;  %1959 = vmatprep.subr.bf16.mxu1 %v2142_v21 }
 0x232   :  { %822 = vmatprep.mubr.f32.mxu0 %v2141_v0  ;;  %1841 = vmatprep.mubr.msk.f32.mxu1 %vm2143_vm1, %v2141_v0 }
 0x234   :  { %1955 = vmatpush1.bf16.msra.mxu0 %v2185_v25  ;;  %1961 = vmatpush3.bf16.msra.mxu1 %v2198_v29 }
 0x235   :  { %1963 = vmatprep.subr.bf16.mxu0 %v2176_v12  ;;  %1970 = vmatprep.subr.bf16.mxu1 %v2142_v21 }
 0x302   :  { %v651_v50 = vpop.f32.mrb[4].mxu0  ;;  %v722_v52 = vpop.f32.mrb[8].mxu1 }
 0x303   :  { %v652_v54 = vadd.f32 %v651_v50, %v2219_v48  ;;  %v653_v55 = vpop.f32.mrb[5].mxu0  ;;  %v1832_v56 = vpop.f32.mrb[9].mxu1  ;;  %v723_v5 = vadd.f32 %v722_v52, %v2225_v63 }
 0x304   :  { %v654_v57 = vadd.f32 %v653_v55, %v2222_v51  ;;  %v927_v55 = vld [vmem:[#allocation2 + $0x4] ss:$8 sm:$0x7] }
 0x305   :  { %v726_v58 = vadd.f32 %v652_v54, %v581_v53 }
 0x306   :  { %v736_v61 = vadd.f32 %v734_v59, %v654_v57 }
 0x307   :  { %v1722_v60 = vmul.f32 -1.442695, %v726_v58 }
 0x308   :  { %v1723_v62 = vmul.f32 -1.442695, %v736_v61  ;;  %v1080_v61 = vrot.slane %v927_v55, 1 }
 0x309   :  { %2050 = vpow2.f32 %v1722_v60 }
 0x30a   :  { %2052 = vpow2.f32 %v1723_v62 }
 0x313   :  { %v2051_v1 = vpop.eup %2050 }
 0x314   :  { %v730_v2 = vadd.f32 1.0, %v2051_v1  ;;  %v2053_v3 = vpop.eup %2052 }
 0x315   :  { %v740_v4 = vadd.f32 1.0, %v2053_v3 }
 0x316   :  { %2054 = vrcp.f32 %v730_v2 }
 0x317   :  { %2056 = vrcp.f32 %v740_v4 }
 0x320   :  { %v2055_v6 = vpop.eup %2054 }
 0x321   :  { %v743_v7 = vmul.f32 %v2055_v6, %v723_v5  ;;  %v2057_v10 = vpop.eup %2056 }
 0x322   :  { %v748_v11 = vsub.f32 1.0, %v2057_v10  ;;  %v750_v15 = vmul.f32 %v2057_v10, %v578_v49  ;;  %v1090_v10 = vrot.slane %v927_v55, 2 }
 0x323   :  { %v746_v9 = vadd.f32 %v744_v8, %v743_v7 }
 0x325   :  { %2058 = vtanh.f32 %v746_v9 }
 0x32f   :  { %v2059_v13 = vpop.eup %2058 }
 0x330   :  { %v749_v14 = vmul.f32 %v2059_v13, %v748_v11 }
 0x332   :  { %v751_v16 = vadd.f32 %v750_v15, %v749_v14 }
 0x334   :  { %752 = vst.msk [vmem:[#allocation3 + $0x2] sm:$0x1] %vm405_vm3, %v751_v16  ;;  %1724 = vmatmul.mubr.msk.f32.vlgmr.msra.gmra.mrb[6].mxu0 %vm234_vm2, %v751_v16  ;;  %1842 = vmatmul.mubr.msk.f32.vlgmr.msra.gmra.mrb[10].mxu1 %vm234_vm2, %v751_v16 }
 0x335   :  { %1965 = vmatpush1.bf16.msra.mxu0 %v2178_v17  ;;  %1972 = vmatpush3.bf16.msra.mxu1 %v2191_v26 }
 0x336   :  { %1967 = vmatprep.subr.bf16.mxu0 %v2182_v22  ;;  %1973 = vmatprep.subr.bf16.mxu1 %v2142_v21 }
 0x337   :  { %995 = vmatprep.mubr.f32.mxu0 %v2141_v0  ;;  %1852 = vmatprep.mubr.msk.f32.mxu1 %vm2143_vm1, %v2141_v0 }
 0x339   :  { %1969 = vmatpush1.bf16.msra.mxu0 %v2185_v25  ;;  %1975 = vmatpush3.bf16.msra.mxu1 %v2198_v29 }
 0x33a   :  { %1977 = vmatprep.subr.bf16.mxu0 %v2176_v12  ;;  %1984 = vmatprep.subr.bf16.mxu1 %v2142_v21 }
 0x407   :  { %v824_v18 = vpop.f32.mrb[6].mxu0  ;;  %v895_v19 = vpop.f32.mrb[10].mxu1 }
 0x408   :  { %v825_v23 = vadd.f32 %v824_v18, %v2219_v48  ;;  %v826_v24 = vpop.f32.mrb[7].mxu0  ;;  %v1843_v27 = vpop.f32.mrb[11].mxu1  ;;  %v896_v40 = vadd.f32 %v895_v19, %v2225_v63 }
 0x409   :  { %v827_v28 = vadd.f32 %v826_v24, %v2222_v51  ;;  %v1100_v24 = vld [vmem:[#allocation2 + $0x5] ss:$8 sm:$0x7] }
 0x40a   :  { %v899_v31 = vadd.f32 %v825_v23, %v754_v20 }
 0x40b   :  { %v909_v34 = vadd.f32 %v907_v32, %v827_v28 }
 0x40c   :  { %v1726_v33 = vmul.f32 -1.442695, %v899_v31 }
 0x40d   :  { %v1727_v35 = vmul.f32 -1.442695, %v909_v34  ;;  %v1253_v34 = vrot.slane %v1100_v24, 1 }
 0x40e   :  { %2060 = vpow2.f32 %v1726_v33 }
 0x40f   :  { %2062 = vpow2.f32 %v1727_v35 }
 0x418   :  { %v2061_v36 = vpop.eup %2060 }
 0x419   :  { %v903_v37 = vadd.f32 1.0, %v2061_v36  ;;  %v2063_v38 = vpop.eup %2062 }
 0x41a   :  { %v913_v39 = vadd.f32 1.0, %v2063_v38 }
 0x41b   :  { %2064 = vrcp.f32 %v903_v37 }
 0x41c   :  { %2066 = vrcp.f32 %v913_v39 }
 0x425   :  { %v2065_v41 = vpop.eup %2064 }
 0x426   :  { %v916_v42 = vmul.f32 %v2065_v41, %v896_v40  ;;  %v2067_v45 = vpop.eup %2066 }
 0x427   :  { %v921_v46 = vsub.f32 1.0, %v2067_v45  ;;  %v923_v50 = vmul.f32 %v2067_v45, %v751_v16 }
 0x428   :  { %v919_v44 = vadd.f32 %v917_v43, %v916_v42 }
 0x42a   :  { %2068 = vtanh.f32 %v919_v44  ;;  %v1263_v44 = vrot.slane %v1100_v24, 2 }
 0x434   :  { %v2069_v47 = vpop.eup %2068 }
 0x435   :  { %v922_v49 = vmul.f32 %v2069_v47, %v921_v46 }
 0x437   :  { %v924_v52 = vadd.f32 %v923_v50, %v922_v49 }
 0x439   :  { %925 = vst.msk [vmem:[#allocation3 + $0x3] sm:$0x1] %vm405_vm3, %v924_v52  ;;  %1728 = vmatmul.mubr.msk.f32.vlgmr.msra.gmra.mrb[8].mxu0 %vm234_vm2, %v924_v52  ;;  %1853 = vmatmul.mubr.msk.f32.vlgmr.msra.gmra.mrb[12].mxu1 %vm234_vm2, %v924_v52 }
 0x43a   :  { %1979 = vmatpush1.bf16.msra.mxu0 %v2178_v17  ;;  %1986 = vmatpush3.bf16.msra.mxu1 %v2191_v26 }
 0x43b   :  { %1981 = vmatprep.subr.bf16.mxu0 %v2182_v22  ;;  %1987 = vmatprep.subr.bf16.mxu1 %v2142_v21 }
 0x43c   :  { %1168 = vmatprep.mubr.f32.mxu0 %v2141_v0  ;;  %1863 = vmatprep.mubr.msk.f32.mxu1 %vm2143_vm1, %v2141_v0 }
 0x43e   :  { %1983 = vmatpush1.bf16.msra.mxu0 %v2185_v25  ;;  %1989 = vmatpush3.bf16.msra.mxu1 %v2198_v29 }
 0x43f   :  { %1991 = vmatprep.subr.bf16.mxu0 %v2176_v12  ;;  %1998 = vmatprep.subr.bf16.mxu1 %v2142_v21 }
 0x50c   :  { %v997_v53 = vpop.f32.mrb[8].mxu0  ;;  %v1068_v54 = vpop.f32.mrb[12].mxu1 }
 0x50d   :  { %v998_v56 = vadd.f32 %v997_v53, %v2219_v48  ;;  %v999_v57 = vpop.f32.mrb[9].mxu0  ;;  %v1854_v58 = vpop.f32.mrb[13].mxu1  ;;  %v1069_v7 = vadd.f32 %v1068_v54, %v2225_v63 }
 0x50e   :  { %v1000_v59 = vadd.f32 %v999_v57, %v2222_v51 }
 0x50f   :  { %v1072_v60 = vadd.f32 %v998_v56, %v927_v55 }
 0x510   :  { %v1082_v1 = vadd.f32 %v1080_v61, %v1000_v59 }
 0x511   :  { %v1730_v62 = vmul.f32 -1.442695, %v1072_v60 }
 0x512   :  { %v1731_v2 = vmul.f32 -1.442695, %v1082_v1 }
 0x513   :  { %2070 = vpow2.f32 %v1730_v62 }
 0x514   :  { %2072 = vpow2.f32 %v1731_v2 }
 0x51d   :  { %v2071_v3 = vpop.eup %2070 }
 0x51e   :  { %v1076_v4 = vadd.f32 1.0, %v2071_v3  ;;  %v2073_v5 = vpop.eup %2072 }
 0x51f   :  { %v1086_v6 = vadd.f32 1.0, %v2073_v5 }
 0x520   :  { %2074 = vrcp.f32 %v1076_v4 }
 0x521   :  { %2076 = vrcp.f32 %v1086_v6 }
 0x52a   :  { %v2075_v8 = vpop.eup %2074 }
 0x52b   :  { %v1089_v9 = vmul.f32 %v2075_v8, %v1069_v7  ;;  %v2077_v13 = vpop.eup %2076 }
 0x52c   :  { %v1094_v14 = vsub.f32 1.0, %v2077_v13  ;;  %v1096_v18 = vmul.f32 %v2077_v13, %v924_v52 }
 0x52d   :  { %v1092_v11 = vadd.f32 %v1090_v10, %v1089_v9 }
 0x52f   :  { %2078 = vtanh.f32 %v1092_v11 }
 0x539   :  { %v2079_v15 = vpop.eup %2078 }
 0x53a   :  { %v1095_v16 = vmul.f32 %v2079_v15, %v1094_v14  ;;  %v47_v15 = vld [vmem:[#allocation4 + $0xa8] sm:$0xff] }
 0x53c   :  { %v1097_v19 = vadd.f32 %v1096_v18, %v1095_v16  ;;  %v48_v16 = vld [vmem:[#allocation4 + $0xc0] sm:$0xff]  ;;  %v49_v18 = vld [vmem:[#allocation4 + $0xd8] sm:$0xff] }
 0x53e   :  { %1098 = vst.msk [vmem:[#allocation3 + $0x4] sm:$0x1] %vm405_vm3, %v1097_v19  ;;  %1732 = vmatmul.mubr.msk.f32.vlgmr.msra.gmra.mrb[10].mxu0 %vm234_vm2, %v1097_v19  ;;  %1864 = vmatmul.mubr.msk.f32.vlgmr.msra.gmra.mrb[14].mxu1 %vm234_vm2, %v1097_v19 }
 0x53f   :  { %1993 = vmatpush1.bf16.msra.mxu0 %v2178_v17  ;;  %2000 = vmatpush3.bf16.msra.mxu1 %v2191_v26 }
 0x540   :  { %1995 = vmatprep.subr.bf16.mxu0 %v2182_v22  ;;  %2001 = vmatprep.subr.bf16.mxu1 %v2142_v21 }
 0x541   :  { %1341 = vmatprep.mubr.f32.mxu0 %v2141_v0  ;;  %1874 = vmatprep.mubr.msk.f32.mxu1 %vm2143_vm1, %v2141_v0 }
 0x543   :  { %1997 = vmatpush1.bf16.msra.mxu0 %v2185_v25  ;;  %2003 = vmatpush3.bf16.msra.mxu1 %v2198_v29 }
 0x544   :  { %2005 = vmatprep.subr.bf16.mxu0 %v2176_v12  ;;  %2012 = vmatprep.subr.bf16.mxu1 %v2142_v21 }
 0x611   :  { %v1170_v20 = vpop.f32.mrb[10].mxu0  ;;  %v1241_v23 = vpop.f32.mrb[14].mxu1 }
 0x612   :  { %v1171_v27 = vadd.f32 %v1170_v20, %v2219_v48  ;;  %v1172_v28 = vpop.f32.mrb[11].mxu0  ;;  %v1865_v31 = vpop.f32.mrb[15].mxu1  ;;  %v1242_v41 = vadd.f32 %v1241_v23, %v2225_v63  ;;  %v50_v20 = vld [vmem:[#allocation4 + $0xf0] sm:$0xff] }
 0x613   :  { %v1173_v32 = vadd.f32 %v1172_v28, %v2222_v51  ;;  %v2022_v23 = vpack.c.bf16 %v50_v20, %v49_v18  ;;  %v1446_v28 = vld [vmem:[#allocation2 + $0x7] ss:$8 sm:$0x7] }
 0x614   :  { %v1245_v33 = vadd.f32 %v1171_v27, %v1100_v24 }
 0x615   :  { %v1255_v36 = vadd.f32 %v1253_v34, %v1173_v32 }
 0x616   :  { %v1734_v35 = vmul.f32 -1.442695, %v1245_v33 }
 0x617   :  { %v1735_v37 = vmul.f32 -1.442695, %v1255_v36 }
 0x618   :  { %2080 = vpow2.f32 %v1734_v35  ;;  %v1599_v35 = vrot.slane %v1446_v28, 1 }
 0x619   :  { %2082 = vpow2.f32 %v1735_v37 }
 0x622   :  { %v2081_v38 = vpop.eup %2080 }
 0x623   :  { %v1249_v12 = vadd.f32 1.0, %v2081_v38  ;;  %v2083_v39 = vpop.eup %2082 }
 0x624   :  { %v1259_v40 = vadd.f32 1.0, %v2083_v39 }
 0x625   :  { %2084 = vrcp.f32 %v1249_v12 }
 0x626   :  { %2086 = vrcp.f32 %v1259_v40 }
 0x62f   :  { %v2085_v42 = vpop.eup %2084 }
 0x630   :  { %v1262_v43 = vmul.f32 %v2085_v42, %v1242_v41  ;;  %v2087_v46 = vpop.eup %2086 }
 0x631   :  { %v1267_v47 = vsub.f32 1.0, %v2087_v46  ;;  %v1269_v52 = vmul.f32 %v2087_v46, %v1097_v19  ;;  %v2019_v19 = vpack.c.bf16 %v48_v16, %v47_v15 }
 0x632   :  { %v1265_v45 = vadd.f32 %v1263_v44, %v1262_v43  ;;  %v1609_v43 = vrot.slane %v1446_v28, 2 }
 0x634   :  { %2088 = vtanh.f32 %v1265_v45 }
 0x63e   :  { %v2089_v49 = vpop.eup %2088 }
 0x63f   :  { %v1268_v50 = vmul.f32 %v2089_v49, %v1267_v47 }
 0x641   :  { %v1270_v53 = vadd.f32 %v1269_v52, %v1268_v50 }
 0x643   :  { %1271 = vst.msk [vmem:[#allocation3 + $0x5] sm:$0x1] %vm405_vm3, %v1270_v53  ;;  %1736 = vmatmul.mubr.msk.f32.vlgmr.msra.gmra.mrb[12].mxu0 %vm234_vm2, %v1270_v53  ;;  %1875 = vmatmul.mubr.msk.f32.vlgmr.msra.gmra.mrb[16].mxu1 %vm234_vm2, %v1270_v53 }
 0x644   :  { %2007 = vmatpush1.bf16.msra.mxu0 %v2178_v17  ;;  %2014 = vmatpush3.bf16.msra.mxu1 %v2191_v26  ;;  %v1273_v17 = vld [vmem:[#allocation2 + $0x6] ss:$8 sm:$0x7] }
 0x645   :  { %2009 = vmatprep.subr.bf16.mxu0 %v2182_v22  ;;  %2015 = vmatprep.subr.bf16.mxu1 %v2142_v21  ;;  %v1426_v59 = vrot.slane %v1273_v17, 1  ;;  %v1436_v6 = vrot.slane %v1273_v17, 2 }
 0x646   :  { %1514 = vmatprep.mubr.f32.mxu0 %v2141_v0  ;;  %1885 = vmatprep.mubr.msk.f32.mxu1 %vm2143_vm1, %v2141_v0 }
 0x648   :  { %2011 = vmatpush1.bf16.msra.mxu0 %v2185_v25  ;;  %2017 = vmatpush3.bf16.msra.mxu1 %v2198_v29 }
 0x649   :  { %2018 = vmatprep.subr.bf16.mxu0 %v2142_v21 }
 0x716   :  { %v1343_v54 = vpop.f32.mrb[12].mxu0  ;;  %v1414_v55 = vpop.f32.mrb[16].mxu1 }
 0x717   :  { %v1344_v26 = vadd.f32 %v1343_v54, %v2219_v48  ;;  %v1345_v56 = vpop.f32.mrb[13].mxu0  ;;  %v1876_v22 = vpop.f32.mrb[17].mxu1  ;;  %v1415_v3 = vadd.f32 %v1414_v55, %v2225_v63 }
 0x718   :  { %v1346_v57 = vadd.f32 %v1345_v56, %v2222_v51 }
 0x719   :  { %v1418_v58 = vadd.f32 %v1344_v26, %v1273_v17 }
 0x71a   :  { %v1428_v61 = vadd.f32 %v1426_v59, %v1346_v57 }
 0x71b   :  { %v1738_v60 = vmul.f32 -1.442695, %v1418_v58 }
 0x71c   :  { %v1739_v62 = vmul.f32 -1.442695, %v1428_v61 }
 0x71d   :  { %2090 = vpow2.f32 %v1738_v60 }
 0x71e   :  { %2092 = vpow2.f32 %v1739_v62 }
 0x727   :  { %v2091_v25 = vpop.eup %2090 }
 0x728   :  { %v1422_v29 = vadd.f32 1.0, %v2091_v25  ;;  %v2093_v1 = vpop.eup %2092 }
 0x729   :  { %v1432_v2 = vadd.f32 1.0, %v2093_v1 }
 0x72a   :  { %2094 = vrcp.f32 %v1422_v29 }
 0x72b   :  { %2096 = vrcp.f32 %v1432_v2 }
 0x734   :  { %v2095_v4 = vpop.eup %2094 }
 0x735   :  { %v1435_v5 = vmul.f32 %v2095_v4, %v1415_v3  ;;  %v2097_v8 = vpop.eup %2096 }
 0x736   :  { %v1440_v9 = vsub.f32 1.0, %v2097_v8  ;;  %v1442_v13 = vmul.f32 %v2097_v8, %v1270_v53  ;;  %v1693_v53 = vand.u32 127, %v54_v30 }
 0x737   :  { %v1438_v7 = vadd.f32 %v1436_v6, %v1435_v5 }
 0x738   :  { %vm1694_vm4 = vcmp.lt.s32.totalorder %v1693_v53, 4 }
 0x739   :  { %2098 = vtanh.f32 %v1438_v7 }
 0x743   :  { %v2099_v10 = vpop.eup %2098 }
 0x744   :  { %v1441_v11 = vmul.f32 %v2099_v10, %v1440_v9 }
 0x746   :  { %v1443_v14 = vadd.f32 %v1442_v13, %v1441_v11 }
 0x748   :  { %1444 = vst.msk [vmem:[#allocation3 + $0x6] sm:$0x1] %vm405_vm3, %v1443_v14  ;;  %1740 = vmatmul.mubr.msk.f32.vlgmr.msra.gmra.mrb[14].mxu0 %vm234_vm2, %v1443_v14  ;;  %1886 = vmatmul.mubr.msk.f32.vlgmr.msra.gmra.mrb[18].mxu1 %vm234_vm2, %v1443_v14 }
 0x749   :  { %1896 = vmatprep.mubr.msk.f32.mxu0 %vm2143_vm1, %v2141_v0  ;;  %2020 = vmatpush3.bf16.msra.mxu0 %v2019_v19 }
 0x74a   :  { %2021 = vmatprep.subr.bf16.mxu0 %v2142_v21 }
 0x74d   :  { %2023 = vmatpush3.bf16.msra.mxu0 %v2022_v23 }
 0x81b   :  { %v1516_v24 = vpop.f32.mrb[14].mxu0  ;;  %v1587_v27 = vpop.f32.mrb[18].mxu1 }
 0x81c   :  { %v1517_v31 = vadd.f32 %v1516_v24, %v2219_v48  ;;  %v1518_v32 = vpop.f32.mrb[15].mxu0  ;;  %v1887_v33 = vpop.f32.mrb[19].mxu1  ;;  %v1588_v41 = vadd.f32 %v1587_v27, %v2225_v63  ;;  %v51_v63 = vld [vmem:[#allocation4 + $0x108] ss:$0 sm:$0xff] }
 0x81d   :  { %v1519_v34 = vadd.f32 %v1518_v32, %v2222_v51 }
 0x81e   :  { %v1591_v0 = vadd.f32 %v1517_v31, %v1446_v28 }
 0x81f   :  { %v1601_v37 = vadd.f32 %v1599_v35, %v1519_v34 }
 0x820   :  { %v1742_v36 = vmul.f32 -1.442695, %v1591_v0 }
 0x821   :  { %v1743_v38 = vmul.f32 -1.442695, %v1601_v37 }
 0x822   :  { %2100 = vpow2.f32 %v1742_v36 }
 0x823   :  { %2102 = vpow2.f32 %v1743_v38 }
 0x82c   :  { %v2101_v12 = vpop.eup %2100 }
 0x82d   :  { %v1595_v39 = vadd.f32 1.0, %v2101_v12  ;;  %v2103_v21 = vpop.eup %2102 }
 0x82e   :  { %v1605_v40 = vadd.f32 1.0, %v2103_v21 }
 0x82f   :  { %2104 = vrcp.f32 %v1595_v39 }
 0x830   :  { %2106 = vrcp.f32 %v1605_v40 }
 0x839   :  { %v2105_v42 = vpop.eup %2104 }
 0x83a   :  { %v1608_v48 = vmul.f32 %v2105_v42, %v1588_v41  ;;  %v2107_v51 = vpop.eup %2106 }
 0x83b   :  { %v1613_v45 = vsub.f32 1.0, %v2107_v51  ;;  %v1615_v49 = vmul.f32 %v2107_v51, %v1443_v14 }
 0x83c   :  { %v1611_v44 = vadd.f32 %v1609_v43, %v1608_v48 }
 0x83e   :  { %2108 = vtanh.f32 %v1611_v44 }
 0x848   :  { %v2109_v46 = vpop.eup %2108 }
 0x849   :  { %v1614_v47 = vmul.f32 %v2109_v46, %v1613_v45 }
 0x84b   :  { %v1616_v50 = vadd.f32 %v1615_v49, %v1614_v47 }
 0x84d   :  { %1617 = vst.msk [vmem:[#allocation3 + $0x7] sm:$0x1] %vm405_vm3, %v1616_v50 }
 0x854   :  { %v1618_v52 = vld [vmem:[#allocation3] sm:$0xff] }
 0x855   :  { %1897 = vmatmul.mubr.msk.f32.vlgmr.msra.gmra.mrb[16].mxu0 %vm234_vm2, %v1618_v52 }
 0x928   :  { %v1688_v54 = vpop.f32.mrb[16].mxu0 }
 0x929   :  { %v1689_v55 = vadd.f32 %v1688_v54, %v51_v63  ;;  %v1898_v17 = vpop.f32.mrb[17].mxu0 }
 0x92b   :  { %v1695_v26 = vsel %vm1694_vm4, %v1689_v55, -1e+30 }
 0x92c   :  { %1696 = vmax.xlane.f32.xlu0 %v1695_v26 }
 0x9b9   :  { %v1697_v56 = vpop.xlane.xlu0 %1696 }
 0x9ba   :  { %v1698_v22 = vsub.f32 %v1695_v26, %v1697_v56 }
 0x9bc   :  { %v1699_v57 = vmul.f32 1.442695, %v1698_v22 }
 0x9be   :  { %2110 = vpow2.f32 %v1699_v57 }
 0x9c8   :  { %v2111_v58 = vpop.eup %2110 }
 0x9c9   :  { %1701 = vadd.xlane.f32.xlu0 %v2111_v58 }
 0xa56   :  { %v1702_v59 = vpop.xlane.xlu0 %1701 }
 0xa57   :  { %2112 = vlog2.f32 %v1702_v59 }
 0xa61   :  { %v2113_v60 = vpop.eup %2112 }
 0xa62   :  { %v1704_v61 = vmul.f32 0.6931472, %v2113_v60 }
 0xa64   :  { %v1705_v62 = vsub.f32 %v1698_v22, %v1704_v61 }
 0xa66   :  { %1706 = vst [vmem:[%s2346_s2] sm:$0xff] %v1705_v62 }
 0xa67   :  { %1711 = vsyncpa [#allocation5], 1 }

</bundles_post_ra>
